<compile_context>
chip_gen: v5e
topology: v5e:2x2
jax: 0.10.0
libtpu: 0.0.40
codegen_flags: <defaults>
</compile_context>

<pallas_src>
import functools

import jax
import jax.numpy as jnp
from jax import lax
from jax.experimental import pallas as pl
from jax.experimental.pallas import tpu as pltpu


# ------------------------------- kernels ----------------------------------- #

def _conv_stats_kernel(x_ref, w_ref, b_ref, y_ref, st_ref, *,
                       bl, np_true, h_img, w_img,
                       need_lane_mask, need_pad_mask):
    """Pass 1: conv as ONE MXU matmul + bias, border/lane masking, BN partials.

      x_ref  : (K, BL)     bf16 im2col / polyphase input columns      (VMEM)
      w_ref  : (BM, K)     bf16 equivalent forward-conv weights       (VMEM)
      b_ref  : (BM, 1)     f32 conv-transpose bias per output row     (VMEM)
      y_ref  : (BM, BL)    un-normalized conv output (y_dtype)        (VMEM)
      st_ref : (1, BM, 2)  per-(row, lane-block) [sum, sum_sq]        (VMEM)
    """
    y = jnp.dot(w_ref[...], x_ref[...], preferred_element_type=jnp.float32)
    y = y + b_ref[...]                                  # bias broadcast on lanes

    mask = None
    if need_lane_mask or need_pad_mask:
        lane = (pl.program_id(1) * bl
                + lax.broadcasted_iota(jnp.int32, (1, bl), 1))
    if need_lane_mask:                                  # lanes past N*H*W padding
        mask = lane < np_true
    if need_pad_mask:
        # rows ordered  co*4 + (ry*2 + rx);  ZeroPad2d([0,1,0,1]) zeroes the last
        # odd output row / column, i.e. odd-phase rows with h==H-1 / w==W-1.
        pos = lane % (h_img * w_img)
        last_col = (pos % w_img) == (w_img - 1)
        last_row = (pos // w_img) == (h_img - 1)
        row = lax.broadcasted_iota(jnp.int32, (y.shape[0], 1), 0)
        rx = (row % 2) == 1
        ry = ((row // 2) % 2) == 1
        good = jnp.logical_not((rx & last_col) | (ry & last_row))
        mask = good if mask is None else (mask & good)
    if mask is not None:
        y = jnp.where(mask, y, 0.0)                     # exact zeros (in BN stats)

    y_ref[...] = y.astype(y_ref.dtype)
    s = jnp.sum(y, axis=-1, keepdims=True)              # (BM, 1)  XLU reduce
    ss = jnp.sum(y * y, axis=-1, keepdims=True)         # (BM, 1)
    st_ref[...] = jnp.concatenate([s, ss], axis=-1)[None]


def _bn_elu_kernel(y_ref, ss_ref, o_ref):
    """Pass 2: y * scale + shift, then ELU(alpha=1)."""
    y = y_ref[...].astype(jnp.float32)
    scale = ss_ref[:, 0:1]
    shift = ss_ref[:, 1:2]
    yn = y * scale + shift
    o_ref[...] = jnp.where(yn > 0.0, yn,
                           jnp.exp(jnp.minimum(yn, 0.0)) - 1.0).astype(o_ref.dtype)


# ------------------------------- helpers ----------------------------------- #

def _round_up(v, m):
    return (v + m - 1) // m * m


def _pad_contraction(k):
    """Pad K to a multiple of 8 always; to a multiple of 128 only when that is
    cheap (<= 12.5% extra rows)."""
    k8 = _round_up(k, 8)
    k128 = _round_up(k, 128)
    return k128 if k128 * 8 <= k * 9 else k8


def _pick_row_block(m_rows, target=256):
    """Largest channel-row block <= target that divides m_rows and is a multiple
    of 32 (legal for f32/bf16/int8 tiling); falls back to the full extent."""
    if m_rows <= target:
        return m_rows
    for d in range(target, 0, -1):
        if d % 32 == 0 and m_rows % d == 0:
            return d
    return m_rows


def _pick_lane_block(np_pad, target=2048):
    """Largest multiple of 128 that divides np_pad and is <= target."""
    q = np_pad // 128
    dmax = max(1, target // 128)
    for d in range(min(dmax, q), 0, -1):
        if q % d == 0:
            return 128 * d
    return np_pad


def _vmem_limit(block_bytes):
    """Size the scoped-VMEM limit from the real per-step footprint, clamped to a
    fraction of the device's physical VMEM (64 MiB on v7x, 128 MiB on v5e/v6e)."""
    try:
        cap = int(pltpu.get_tpu_info().vmem_capacity_bytes)
    except Exception:
        cap = 64 * 1024 * 1024
    want = int(block_bytes) + (4 << 20)
    want = max(want, 16 << 20)
    return int(min(want, (cap * 3) // 4))


# ------------------------------- wrapper ----------------------------------- #

def fconv_unit_forward(x, weight, bias, gamma, beta, *, unsampling=False,
                       eps=1e-5, out_dtype=None, y_dtype=jnp.bfloat16,
                       compute_dtype=jnp.bfloat16,
                       row_block_target=256, lane_block_target=2048):
    """JAX/Pallas equivalent of Fconv_unit.forward (NCHW in / NCHW out).

    `weight` uses the PyTorch ConvTranspose2d layout: (Cin, Cout, 3, 3).
    """
    out_dtype = x.dtype if out_dtype is None else out_dtype
    x = x.astype(jnp.float32)
    wt = weight.astype(jnp.float32)
    bias = bias.astype(jnp.float32)
    gamma = gamma.astype(jnp.float32)
    beta = beta.astype(jnp.float32)

    n, c_in, h, w = x.shape
    c_out = wt.shape[1]
    p = h * w                                           # per-phase spatial size

    # TODO(synk): wrapper-side im2col / polyphase expansion (see header comment).
    if not unsampling:
        # stride-1 ConvTranspose2d(3,1,1) == 3x3 correlation of the 1-padded
        # input with the flipped, (in,out)-swapped kernel.
        phases = 1
        xp = jnp.pad(x, ((0, 0), (0, 0), (1, 1), (1, 1))).astype(compute_dtype)
        cols = [xp[:, :, kh:kh + h, kw:kw + w]
                for kh in range(3) for kw in range(3)]
        x_cols = jnp.stack(cols, axis=2).reshape(n, c_in * 9, p)
        w_mat = jnp.transpose(wt[:, :, ::-1, ::-1], (1, 0, 2, 3)).reshape(
            c_out, c_in * 9)
        b_vec = bias
        h_out, w_out = h, w
    else:
        # stride-2 ConvTranspose2d(3,2,1) + ZeroPad2d([0,1,0,1]) via polyphase
        # (sub-pixel) decomposition: 4 output parities -> 4 extra rows / channel.
        phases = 4
        xc = x.astype(compute_dtype)
        xpad = jnp.pad(xc, ((0, 0), (0, 0), (0, 1), (0, 1)))
        x00 = xc
        x01 = xpad[:, :, :h, 1:1 + w]
        x10 = xpad[:, :, 1:1 + h, :w]
        x11 = xpad[:, :, 1:1 + h, 1:1 + w]
        x_cols = jnp.stack([x00, x01, x10, x11], axis=1).reshape(n, 4 * c_in, p)

        def tap(kh, kw):                                # Wt[ci,co,kh,kw] -> (Cout,Cin)
            return jnp.transpose(wt[:, :, kh, kw], (1, 0))

        zero = jnp.zeros((c_out, c_in), jnp.float32)
        phase_taps = [                                  # row = co*4 + (ry*2 + rx)
            [tap(1, 1), zero,      zero,      zero],    # (even, even)
            [tap(1, 2), tap(1, 0), zero,      zero],    # (even, odd )
            [tap(2, 1), zero,      tap(0, 1), zero],    # (odd , even)
            [tap(2, 2), tap(2, 0), tap(0, 2), tap(0, 0)],   # (odd, odd)
        ]
        w_mat = jnp.stack([jnp.concatenate(pt, axis=1) for pt in phase_taps],
                          axis=1).reshape(4 * c_out, 4 * c_in)
        b_vec = jnp.repeat(bias, 4)
        h_out, w_out = 2 * h, 2 * w

    m_rows = c_out * phases
    k = x_cols.shape[1]
    np_true = n * p

    # lane-dense layout: X columns (K, N*P), output rows (M, N*P)
    x_mat = jnp.transpose(x_cols, (1, 0, 2)).reshape(k, np_true)

    k_pad = _pad_contraction(k)
    np_pad = _round_up(np_true, 128)
    if (k_pad != k) or (np_pad != np_true):
        x_mat = jnp.pad(x_mat, ((0, k_pad - k), (0, np_pad - np_true)))
    if k_pad != k:
        w_mat = jnp.pad(w_mat, ((0, 0), (0, k_pad - k)))

    x_mat = x_mat.astype(compute_dtype)
    w_mat = w_mat.astype(compute_dtype)
    b_rows = b_vec.reshape(m_rows, 1).astype(jnp.float32)

    bm = _pick_row_block(m_rows, row_block_target)
    bl = _pick_lane_block(np_pad, lane_block_target)
    grid = (m_rows // bm, np_pad // bl)
    n_lane_blocks = np_pad // bl

    csize = jnp.dtype(compute_dtype).itemsize
    ysize = jnp.dtype(y_dtype).itemsize
    osize = jnp.dtype(out_dtype).itemsize

    # ---------------- pass 1: conv + BN partial sums ------------------------
    kernel1 = functools.partial(
        _conv_stats_kernel, bl=bl, np_true=np_true, h_img=h, w_img=w,
        need_lane_mask=(np_pad != np_true), need_pad_mask=(phases == 4))

    blk1 = 2 * (k_pad * bl * csize + bm * k_pad * csize + bm * 128 * 4
                + bm * bl * ysize + bm * 128 * 4)
    y_flat, partial_stats = pl.pallas_call(
        kernel1,
        grid=grid,
        out_shape=(jax.ShapeDtypeStruct((m_rows, np_pad), y_dtype),
                   jax.ShapeDtypeStruct((n_lane_blocks, m_rows, 2), jnp.float32)),
        in_specs=[pl.BlockSpec((k_pad, bl), lambda i, j: (0, j)),
                  pl.BlockSpec((bm, k_pad), lambda i, j: (i, 0)),
                  pl.BlockSpec((bm, 1), lambda i, j: (i, 0))],
        out_specs=(pl.BlockSpec((bm, bl), lambda i, j: (i, j)),
                   pl.BlockSpec((1, bm, 2), lambda i, j: (j, i, 0))),
        compiler_params=pltpu.CompilerParams(
            dimension_semantics=("parallel", "parallel"),
            vmem_limit_bytes=_vmem_limit(blk1)),
    )(x_mat, w_mat, b_rows)

    # ---------------- tiny per-channel reduction (wrapper / XLA) ------------
    sums = jnp.sum(partial_stats, axis=0)               # (m_rows, 2)
    if phases > 1:
        per_chan = sums.reshape(c_out, phases, 2).sum(axis=1)
    else:
        per_chan = sums
    count = float(n * h_out * w_out)                    # ZeroPad zeros ARE counted
    mean = per_chan[:, 0] / count
    var = jnp.maximum(per_chan[:, 1] / count - mean * mean, 0.0)
    scale_c = gamma * lax.rsqrt(var + eps)
    shift_c = beta - mean * scale_c
    if phases > 1:
        scale_r = jnp.repeat(scale_c, phases)
        shift_r = jnp.repeat(shift_c, phases)
    else:
        scale_r, shift_r = scale_c, shift_c
    scale_shift = jnp.stack([scale_r, shift_r], axis=-1).astype(jnp.float32)

    # ---------------- pass 2: normalize + ELU --------------------------------
    blk2 = 2 * (bm * bl * ysize + bm * 128 * 4 + bm * bl * osize)
    out_flat = pl.pallas_call(
        _bn_elu_kernel,
        grid=grid,
        out_shape=jax.ShapeDtypeStruct((m_rows, np_pad), out_dtype),
        in_specs=[pl.BlockSpec((bm, bl), lambda i, j: (i, j)),
                  pl.BlockSpec((bm, 2), lambda i, j: (i, 0))],
        out_specs=pl.BlockSpec((bm, bl), lambda i, j: (i, j)),
        compiler_params=pltpu.CompilerParams(
            dimension_semantics=("parallel", "parallel"),
            vmem_limit_bytes=_vmem_limit(blk2)),
    )(y_flat, scale_shift)

    # layout plumbing back to NCHW (pure XLA reshape/transpose)
    out = out_flat[:, :np_true]
    if not unsampling:
        out = out.reshape(c_out, n, h, w).transpose(1, 0, 2, 3)
    else:
        out = out.reshape(c_out, 2, 2, n, h, w)
        out = out.transpose(3, 0, 4, 1, 5, 2).reshape(n, c_out, 2 * h, 2 * w)
    return out


# ------------------------------- reference --------------------------------- #

def fconv_unit_reference(x, weight, bias, gamma, beta, *, unsampling=False,
                         eps=1e-5):
    """Pure-JAX/XLA reference mirroring the PyTorch forward pass."""
    x = x.astype(jnp.float32)
    s = 2 if unsampling else 1
    w_eq = jnp.transpose(weight[:, :, ::-1, ::-1], (1, 0, 2, 3))   # OIHW
    y = lax.conv_general_dilated(
        x, w_eq.astype(jnp.float32), window_strides=(1, 1),
        padding=[(1, 1), (1, 1)], lhs_dilation=(s, s),
        dimension_numbers=('NCHW', 'OIHW', 'NCHW'),
        precision=lax.Precision.HIGHEST)
    y = y + bias[None, :, None, None]
    if unsampling:
        y = jnp.pad(y, ((0, 0), (0, 0), (0, 1), (0, 1)))  # ZeroPad2d([0,1,0,1])
    mean = jnp.mean(y, axis=(0, 2, 3), keepdims=True)
    var = jnp.mean((y - mean) ** 2, axis=(0, 2, 3), keepdims=True)
    yn = ((y - mean) * lax.rsqrt(var + eps) * gamma[None, :, None, None]
          + beta[None, :, None, None])
    return jnp.where(yn > 0, yn, jnp.exp(yn) - 1.0)


# --------------------------------- main ------------------------------------ #

if __name__ == "__main__":
    key = jax.random.PRNGKey(0)
    k1, k2, k3, k4, k5 = jax.random.split(key, 5)

    N, Cin, Cout, H, W = 2, 4, 8, 16, 16
    x = jax.random.normal(k1, (N, Cin, H, W), jnp.float32)
    # ConvTranspose2d weight layout: (Cin, Cout, 3, 3)
    weight = 0.1 * jax.random.normal(k2, (Cin, Cout, 3, 3), jnp.float32)
    bias = 0.1 * jax.random.normal(k3, (Cout,), jnp.float32)
    gamma = 1.0 + 0.1 * jax.random.normal(k4, (Cout,), jnp.float32)
    beta = 0.1 * jax.random.normal(k5, (Cout,), jnp.float32)

    # third case (15x15) exercises the lane-padding path (N*H*W not % 128)
    x_odd = jax.random.normal(k1, (N, Cin, 15, 15), jnp.float32)
    cases = [(x, False), (x, True), (x_odd, False)]

    for xi, unsampling in cases:
        out = jax.block_until_ready(
            fconv_unit_forward(xi, weight, bias, gamma, beta,
                               unsampling=unsampling))
        ref = jax.block_until_ready(
            fconv_unit_reference(xi, weight, bias, gamma, beta,
                                 unsampling=unsampling))
        assert out.shape == ref.shape, (out.shape, ref.shape)
        diff = jnp.abs(out.astype(jnp.float32) - ref)
        err_max = float(jnp.max(diff))
        rel = float(jnp.linalg.norm(out.astype(jnp.float32) - ref)
                    / jnp.linalg.norm(ref))
        assert err_max < 5e-2, f"max abs err too large ({unsampling=}): {err_max}"
        assert rel < 1e-2, f"relative L2 err too large ({unsampling=}): {rel}"

    print("KERNEL_OK")
</pallas_src>

<mosaic_0001>
module attributes {stable_mosaic.version = 11 : i64} {
  func.func @_conv_stats_kernel(%arg0: i32, %arg1: i32, %arg2: memref<40x512xbf16, #tpu.memory_space<vmem>>, %arg3: memref<8x40xbf16, #tpu.memory_space<vmem>>, %arg4: memref<8x1xf32, #tpu.memory_space<vmem>>, %arg5: memref<8x512xbf16, #tpu.memory_space<vmem>>, %arg6: memref<1x8x2xf32, #tpu.memory_space<vmem>>) attributes {dimension_semantics = [#tpu.dimension_semantics<parallel>, #tpu.dimension_semantics<parallel>], iteration_bounds = array<i64: 1, 1>, scalar_prefetch = 0 : i64, scratch_operands = 0 : i64, tpu.core_type = #tpu.core_type<tc>, window_params = [{transform_indices = @transform_0, window_bounds = array<i64: 40, 512>}, {transform_indices = @transform_1, window_bounds = array<i64: 8, 40>}, {transform_indices = @transform_2, window_bounds = array<i64: 8, 1>}, {transform_indices = @transform_3, window_bounds = array<i64: 8, 512>}, {transform_indices = @transform_4, window_bounds = array<i64: 1, 8, 2>}]} {
    %c0 = arith.constant 0 : index
    %c0_0 = arith.constant 0 : index
    %0 = vector.load %arg3[%c0, %c0_0] : memref<8x40xbf16, #tpu.memory_space<vmem>>, vector<8x40xbf16>
    %c0_1 = arith.constant 0 : index
    %c0_2 = arith.constant 0 : index
    %1 = vector.load %arg2[%c0_1, %c0_2] : memref<40x512xbf16, #tpu.memory_space<vmem>>, vector<40x512xbf16>
    %cst = arith.constant dense<0.000000e+00> : vector<8x512xf32>
    %2 = tpu.matmul %0, %1, %cst {dimension_numbers = #tpu.dot_dimension_numbers<[1], [0], [0], [1], [0, 0, 1, 1], [], []>} : vector<8x40xbf16>, vector<40x512xbf16>, vector<8x512xf32> -> vector<8x512xf32>
    %c0_3 = arith.constant 0 : index
    %c0_4 = arith.constant 0 : index
    %3 = vector.load %arg4[%c0_3, %c0_4] : memref<8x1xf32, #tpu.memory_space<vmem>>, vector<8x1xf32>
    %4 = vector.broadcast %3 : vector<8x1xf32> to vector<8x512xf32>
    %5 = arith.addf %2, %4 : vector<8x512xf32>
    %6 = arith.truncf %5 : vector<8x512xf32> to vector<8x512xbf16>
    %c0_5 = arith.constant 0 : index
    %c0_6 = arith.constant 0 : index
    %7 = vector.load %arg5[%c0_5, %c0_6] : memref<8x512xbf16, #tpu.memory_space<vmem>>, vector<8x512xbf16>
    tpu.vector_store %arg5[%c0_5, %c0_6], %6 {strides = array<i32>} : memref<8x512xbf16, #tpu.memory_space<vmem>>, vector<8x512xbf16>,
    %cst_7 = arith.constant dense<0.000000e+00> : vector<8xf32>
    %8 = vector.multi_reduction <add>, %5, %cst_7 [1] : vector<8x512xf32> to vector<8xf32>
    %9 = vector.shape_cast %8 : vector<8xf32> to vector<8x1xf32>
    %10 = arith.mulf %5, %5 : vector<8x512xf32>
    %cst_8 = arith.constant dense<0.000000e+00> : vector<8xf32>
    %11 = vector.multi_reduction <add>, %10, %cst_8 [1] : vector<8x512xf32> to vector<8xf32>
    %12 = vector.shape_cast %11 : vector<8xf32> to vector<8x1xf32>
    %13 = tpu.concatenate %9, %12 in 1 : vector<8x1xf32>, vector<8x1xf32> -> vector<8x2xf32>
    %14 = vector.shape_cast %13 : vector<8x2xf32> to vector<1x8x2xf32>
    %c0_9 = arith.constant 0 : index
    %c0_10 = arith.constant 0 : index
    %c0_11 = arith.constant 0 : index
    %15 = vector.load %arg6[%c0_9, %c0_10, %c0_11] : memref<1x8x2xf32, #tpu.memory_space<vmem>>, vector<1x8x2xf32>
    tpu.vector_store %arg6[%c0_9, %c0_10, %c0_11], %14 {strides = array<i32>} : memref<1x8x2xf32, #tpu.memory_space<vmem>>, vector<1x8x2xf32>,
    return
  }
  func.func @transform_0(%arg0: i32, %arg1: i32) -> (i32, i32) {
    %c0_i32 = arith.constant 0 : i32
    %c0_i32_0 = arith.constant 0 : i32
    return %c0_i32, %arg1 : i32, i32
  }
  func.func @transform_1(%arg0: i32, %arg1: i32) -> (i32, i32) {
    %c0_i32 = arith.constant 0 : i32
    %c0_i32_0 = arith.constant 0 : i32
    return %arg0, %c0_i32 : i32, i32
  }
  func.func @transform_2(%arg0: i32, %arg1: i32) -> (i32, i32) {
    %c0_i32 = arith.constant 0 : i32
    %c0_i32_0 = arith.constant 0 : i32
    return %arg0, %c0_i32 : i32, i32
  }
  func.func @transform_3(%arg0: i32, %arg1: i32) -> (i32, i32) {
    %c0_i32 = arith.constant 0 : i32
    return %arg0, %arg1 : i32, i32
  }
  func.func @transform_4(%arg0: i32, %arg1: i32) -> (i32, i32, i32) {
    %c0_i32 = arith.constant 0 : i32
    %c0_i32_0 = arith.constant 0 : i32
    return %arg1, %arg0, %c0_i32 : i32, i32, i32
  }
}

</mosaic_0001>

<bundles_post_ra>
// kernel: tpu_custom_call.1
= control target key start
LH: loop header
LB: loop body
LE: loop exit
PB: predicated region body
PF: predicated region fallthrough
CT: control target
= control target key end

     0   :  { %10 = vsyncpa [#allocation3], 0  ;;  %s364_s0 = inlined_call_operand.hbm [shape: bf16[40,512], index: 0, kind: input, shape index: {}]   ;;  %s365_s1 = inlined_call_operand.vmem [shape: bf16[8,40], index: 1, kind: input, shape index: {}]   ;;  %s366_s2 = inlined_call_operand.vmem [shape: f32[8,1], index: 2, kind: input, shape index: {}]   ;;  %s367_s3 = inlined_call_operand.hbm [shape: bf16[8,512], index: 3, kind: output, shape index: {0}]   ;;  %s368_s4 = inlined_call_operand.vmem [shape: f32[1,8,2], index: 4, kind: output, shape index: {1}]  }
   0x1   :  { %11 = vsyncpa [#allocation4], 0  ;;  %s16_s17 = sshll.u32 %s364_s0, 4  ;;  %s315_s18 = smov [#allocation2]   ;;  %s17_s17 = int_to_ptr.hbm [resolvable:$true] %s16_s17 }
   0x2   :  { %s18_s19 = sshll.u32 %s315_s18, 4  ;;  %s316_s20 = smov 256   ;;  %s19_s19 = int_to_ptr.vmem [resolvable:$true] %s18_s19 }
   0x3   :  { %s317_s21 = smov 16  }
   0x4   :  { %24 = dma.hbm_to_vmem [thread:$0]  %s17_s17, 1280, %s19_s19, [#allocation3], %s316_s20, %s316_s20, %s317_s21  }
   0x5   :  { %311 = dma.done.wait [#allocation3], 1280  }
   0x6   :  { %312 = vsyncadd [#allocation3], 4294966016  ;;  %v318_v0 = vmov 0   ;;  %v43_v1 = vld [vmem:[#allocation2 + $0x40] sm:$0xff]  ;;  %v44_v2 = vld [vmem:[#allocation2 + $0x48] sm:$0xff]  ;;  %vm105_vm0 = vcmask 1043456  }
   0x7   :  { %262 = vset.pattern.permute.xlu0 %v318_v0  ;;  %v77_v3 = vunpack.c.l.b16 %v43_v1  ;;  %v78_v4 = vunpack.c.h.b16 %v43_v1  ;;  %v79_v5 = vunpack.c.l.b16 %v44_v2  ;;  %v80_v6 = vunpack.c.h.b16 %v44_v2  ;;  %v231_v7 = vld [vmem:[#allocation2 + $0x20] sm:$0xf]  ;;  %v255_v8 = vld [vmem:[#allocation2 + $0x2c] sm:$0xf0]  ;;  %v253_v13 = vld [vmem:[#allocation2 + $0x24] sm:$0xf] }
   0x8   :  { %v233_v14 = vld [vmem:[#allocation2 + $0x30] sm:$0xf0]  ;;  %v239_v15 = vld [vmem:[#allocation2 + $0x28] sm:$0xf]  ;;  %v256_v16 = vld [vmem:[#allocation2 + $0x34] sm:$0xf0]  ;;  %v232_v23 = vor.u32 %v255_v8, %v231_v7 }
   0x9   :  { %v89_v9 = vpack.c.b16 %v77_v3, %v77_v3  ;;  %v90_v10 = vpack.c.b16 %v78_v4, %v78_v4  ;;  %v91_v11 = vpack.c.b16 %v79_v5, %v79_v5  ;;  %v92_v12 = vpack.c.b16 %v80_v6, %v80_v6  ;;  %v254_v17 = vld [vmem:[#allocation2 + $0x2c] sm:$0xf]  ;;  %v241_v18 = vld [vmem:[#allocation2 + $0x38] sm:$0xf0]  ;;  %v215_v25 = vld [vmem:[#allocation2] sm:$0xf] }
   0xa   :  { %v236_v24 = vor.u32 %v253_v13, %v233_v14  ;;  %v251_v26 = vld [vmem:[#allocation2 + $0xc] sm:$0xf0]  ;;  %v249_v27 = vld [vmem:[#allocation2 + $0x4] sm:$0xf]  ;;  %v240_v28 = vor.u32 %v256_v16, %v239_v15  ;;  %v244_v29 = vor.u32 %v254_v17, %v241_v18  ;;  %v217_v30 = vld [vmem:[#allocation2 + $0x10] sm:$0xf0] }
   0xb   :  { %v107_v19 = vsel %vm105_vm0, %v89_v9, 0  ;;  %v110_v20 = vsel %vm105_vm0, %v90_v10, 0  ;;  %v113_v21 = vsel %vm105_vm0, %v91_v11, 0  ;;  %v116_v22 = vsel %vm105_vm0, %v92_v12, 0  ;;  %v223_v31 = vld [vmem:[#allocation2 + $0x8] sm:$0xf] }
   0xc   :  { %123 = vmatpush.bf16.msra.mxu0 %v107_v19  ;;  %136 = vmatpush.bf16.msra.mxu1 %v110_v20  ;;  %v45_v32 = vld [vmem:[%s366_s2] sm:$0xff]  ;;  %v252_v33 = vld [vmem:[#allocation2 + $0x14] sm:$0xf0]  ;;  %v250_v34 = vld [vmem:[#allocation2 + $0xc] sm:$0xf]  ;;  %v216_v36 = vor.u32 %v251_v26, %v215_v25  ;;  %v220_v37 = vor.u32 %v249_v27, %v217_v30  ;;  %vm101_vm1 = vcmask 326656  }
   0xd   :  { %149 = vmatpush.bf16.msra.mxu2 %v113_v21  ;;  %162 = vmatpush.bf16.msra.mxu3 %v116_v22  ;;  %v225_v35 = vld [vmem:[#allocation2 + $0x18] sm:$0xf0]  ;;  %v224_v38 = vor.u32 %v252_v33, %v223_v31  ;;  %v34_v40 = vld [vmem:[%s365_s1] sm:$0xf]  ;;  %s319_s1 = smov [#allocation5]   ;;  %s199_s27 = sshll.u32 %s367_s3, 4  ;;  %s200_s27 = int_to_ptr.hbm [resolvable:$true] %s199_s27 }
   0xe   :  { %48 = vperm.xlu0 %262, %v45_v32   ;;  %v228_v39 = vor.u32 %v250_v34, %v225_v35  ;;  %s197_s2 = sshll.u32 %s319_s1, 4  ;;  %vm188_vm2 = vcmask 7168   ;;  %vm190_vm3 = vcmask 15360   ;;  %s198_s2 = int_to_ptr.vmem [resolvable:$true] %s197_s2 }
  0x10   :  { %124 = vmatpush.bf16.msra.mxu0 %v232_v23  ;;  %137 = vmatpush.bf16.msra.mxu1 %v236_v24 }
  0x11   :  { %150 = vmatpush.bf16.msra.mxu2 %v240_v28  ;;  %163 = vmatpush.bf16.msra.mxu3 %v244_v29 }
  0x14   :  { %125 = vmatpush.bf16.msra.mxu0 %v216_v36  ;;  %138 = vmatpush.bf16.msra.mxu1 %v220_v37 }
  0x15   :  { %151 = vmatpush.bf16.msra.mxu2 %v224_v38  ;;  %164 = vmatpush.bf16.msra.mxu3 %v228_v39 }
  0x17   :  { %245 = vmatmul.msk.bf16.vlgmr.msra.gmra.mxu0 %vm101_vm1, %v34_v40  ;;  %246 = vmatmul.msk.bf16.vlgmr.msra.gmra.mxu1 %vm101_vm1, %v34_v40 }
  0x18   :  { %247 = vmatmul.msk.bf16.vlgmr.msra.gmra.mxu2 %vm101_vm1, %v34_v40  ;;  %248 = vmatmul.msk.bf16.vlgmr.msra.gmra.mxu3 %vm101_vm1, %v34_v40 }
  0x80   :  { %v49_v41 = vpop.permute.xlu0 %48 }
  0x94   :  { %v127_v42 = vpop.f32.mrf.mxu0  ;;  %v140_v43 = vpop.f32.mrf.mxu1 }
  0x95   :  { %v128_v44 = vadd.f32 %v127_v42, %v49_v41  ;;  %v141_v45 = vadd.f32 %v140_v43, %v49_v41 }
  0x97   :  { %v170_v46 = vpack.c.bf16 %v141_v45, %v128_v44  ;;  %v179_v47 = vmul.f32 %v128_v44, %v128_v44  ;;  %v180_v48 = vmul.f32 %v141_v45, %v141_v45  ;;  %v174_v49 = vadd.f32 %v141_v45, %v128_v44 }
  0x99   :  { %172 = vst [vmem:[#allocation5] sm:$0xff] %v170_v46  ;;  %v183_v56 = vadd.f32 %v180_v48, %v179_v47 }
  0x9b   :  { %v153_v50 = vpop.f32.mrf.mxu2  ;;  %v166_v51 = vpop.f32.mrf.mxu3 }
  0x9c   :  { %v154_v52 = vadd.f32 %v153_v50, %v49_v41  ;;  %v167_v53 = vadd.f32 %v166_v51, %v49_v41  ;;  %v129_v54 = vpop.f32.mrf.mxu0  ;;  %v142_v55 = vpop.f32.mrf.mxu1 }
  0x9e   :  { %v171_v57 = vpack.c.bf16 %v167_v53, %v154_v52  ;;  %v175_v58 = vadd.f32 %v174_v49, %v154_v52  ;;  %v181_v59 = vmul.f32 %v154_v52, %v154_v52  ;;  %v182_v61 = vmul.f32 %v167_v53, %v167_v53 }
  0xa0   :  { %173 = vst [vmem:[#allocation5 + $0x8] sm:$0xff] %v171_v57  ;;  %v176_v60 = vadd.f32 %v175_v58, %v167_v53  ;;  %v184_v62 = vadd.f32 %v183_v56, %v181_v59 }
  0xa1   :  { %202 = dma.vmem_to_hbm [thread:$0]  %s198_s2, 256, %s200_s27, [#allocation4]  }
  0xa2   :  { %177 = vadd.xlane.f32.xlu0 %v176_v60  ;;  %v185_v63 = vadd.f32 %v184_v62, %v182_v61 }
  0xa3   :  { %v155_v0 = vpop.f32.mrf.mxu2  ;;  %v168_v1 = vpop.f32.mrf.mxu3 }
  0xa4   :  { %186 = vadd.xlane.f32.xlu1 %v185_v63 }
 0x115   :  { %v178_v2 = vpop.xlane.xlu0 %177 }
 0x117   :  { %v187_v3 = vpop.xlane.xlu1 %186 }
 0x118   :  { %v189_v4 = vsel %vm188_vm2, %v178_v2, %v187_v3 }
 0x119   :  { %191 = vst.msk [vmem:[%s368_s4] sm:$0xff] %vm190_vm3, %v189_v4 }
 0x11a   :  { %313 = dma.done.wait [#allocation4], 256  }
 0x11b   :  { %314 = vsyncadd [#allocation4], 4294967040 }
 0x11c   :  { %211 = vsyncpa [#allocation3], 1 }
 0x11d   :  { %212 = vsyncpa [#allocation4], 1 }

</bundles_post_ra>
